<compile_context>
chip_gen: v6e
topology: v6e:2x2x1
jax: 0.10.0
libtpu: 0.0.40
codegen_flags: <defaults>
</compile_context>

<pallas_src>
import functools

import jax
import jax.numpy as jnp
from jax.experimental import pallas as pl
from jax.experimental.pallas import tpu as pltpu


_HALO = 128  # lane-aligned halo block width (multiple of 128, must be >= K-1)


def _round_up(x, m):
    return ((x + m - 1) // m) * m


def conv1d_ncl_kernel(x_ref, halo_ref, w_ref, b_ref, o_ref, *, K):
    """One (batch, L-tile) step of Conv1d in NCL layout.

    x_ref:    (Cin, TL)      main input tile, padded coords [j*TL, (j+1)*TL)
    halo_ref: (Cin, _HALO)   next 128 columns; only the first K-1 are used
    w_ref:    (Cout, K*Cin)  weights laid out as [co, k*Cin + ci]
    b_ref:    (Cout, 1)      bias (f32)
    o_ref:    (Cout, TL)     output tile (L on the lane axis -> dense stores)
    """
    TL = o_ref.shape[-1]
    # Window with right halo: (Cin, TL + K - 1).
    win = jnp.concatenate([x_ref[...], halo_ref[:, : K - 1]], axis=1)
    # im2col: row (k*Cin + ci) of `patches` is x[ci, l + k]  ->  (K*Cin, TL).
    patches = jnp.concatenate([win[:, k:k + TL] for k in range(K)], axis=0)
    # Single MXU contraction over K*Cin = 352, accumulate in f32.
    acc = jnp.dot(w_ref[...], patches, preferred_element_type=jnp.float32)
    acc = acc + b_ref[...].astype(jnp.float32)
    o_ref[...] = acc.astype(o_ref.dtype)


def projection_forward(x_ncl, weight, bias, *, tile_l=1024, compute_dtype=None):
    """Equivalent of Projection.forward.

    x_ncl:  (B, Cin, L)     -- PyTorch NCL input
    weight: (Cout, Cin, K)  -- PyTorch Conv1d weight layout
    bias:   (Cout,)
    compute_dtype: e.g. jnp.bfloat16 on v6e/v7x; None keeps the input dtype.
    returns (B, Cout, L)
    """
    B, Cin, L = x_ncl.shape
    Cout, Cin_w, K = weight.shape
    assert Cin_w == Cin
    assert _HALO >= K - 1
    pad = (K - 1) // 2  # = 5 for K=11 -> "same" length output

    # L tile: multiple of 128 (lane-dense), as large as reasonable.
    tl = _round_up(min(tile_l, _round_up(L, 128)), 128)
    n_l = pl.cdiv(L, tl)
    lp = n_l * tl + _HALO  # padded L seen by the kernel (keeps halo in-bounds)

    out_dtype = x_ncl.dtype
    cdt = jnp.dtype(compute_dtype) if compute_dtype is not None else jnp.dtype(x_ncl.dtype)

    # Only glue: zero-pad along L (conv left pad + tiling/halo slack). No transposes.
    x_pad = jnp.pad(x_ncl, ((0, 0), (0, 0), (pad, lp - L - pad))).astype(cdt)
    # (Cout, Cin, K) -> (Cout, K*Cin) with index [co, k*Cin + ci].
    w2 = jnp.transpose(weight, (0, 2, 1)).reshape(Cout, K * Cin).astype(cdt)
    b2 = bias.reshape(Cout, 1).astype(jnp.float32)

    r = tl // _HALO  # halo block-index stride (in 128-column blocks)

    cost = pl.CostEstimate(
        flops=2 * B * L * K * Cin * Cout,
        transcendentals=0,
        bytes_accessed=(B * Cin * lp + Cout * K * Cin) * cdt.itemsize
        + (B * Cout * n_l * tl) * jnp.dtype(out_dtype).itemsize,
    )

    out_full = pl.pallas_call(
        functools.partial(conv1d_ncl_kernel, K=K),
        out_shape=jax.ShapeDtypeStruct((B, Cout, n_l * tl), out_dtype),
        grid=(B, n_l),
        in_specs=[
            # main input tile (batch dim squeezed)
            pl.BlockSpec((None, Cin, tl), lambda b, j: (b, 0, j)),
            # 128-wide halo block starting at column (j+1)*tl
            pl.BlockSpec((None, Cin, _HALO), lambda b, j: (b, 0, (j + 1) * r)),
            # weights / bias: full blocks, replicated across the grid
            pl.BlockSpec((Cout, K * Cin), lambda b, j: (0, 0)),
            pl.BlockSpec((Cout, 1), lambda b, j: (0, 0)),
        ],
        out_specs=pl.BlockSpec((None, Cout, tl), lambda b, j: (b, 0, j)),
        compiler_params=pltpu.CompilerParams(
            dimension_semantics=("parallel", "parallel"),
            vmem_limit_bytes=32 * 1024 * 1024,
        ),
        cost_estimate=cost,
    )(x_pad, x_pad, w2, b2)

    if n_l * tl != L:
        out_full = out_full[:, :, :L]
    return out_full


def _reference_forward(x_ncl, weight, bias):
    """Pure-JAX reference (matches torch.nn.Conv1d semantics)."""
    K = weight.shape[-1]
    pad = (K - 1) // 2
    y = jax.lax.conv_general_dilated(
        x_ncl, weight,
        window_strides=(1,),
        padding=[(pad, pad)],
        dimension_numbers=("NCH", "OIH", "NCH"),
    )
    return y + bias.reshape(1, -1, 1)


if __name__ == "__main__":
    # Module hyperparameters (defaults from the PyTorch module).
    orig_dim = 12     # out_channels
    embed_dim = 32    # in_channels
    ksize = 11

    # Small example shapes: batch=2, seq length=16.
    B, L = 2, 16

    key = jax.random.PRNGKey(0)
    k_x, k_w, k_b = jax.random.split(key, 3)

    # Deterministic parameter init mimicking PyTorch Conv1d default
    # (uniform in +/- 1/sqrt(fan_in), fan_in = Cin * K).
    fan_in = embed_dim * ksize
    bound = 1.0 / jnp.sqrt(jnp.float32(fan_in))
    weight = jax.random.uniform(
        k_w, (orig_dim, embed_dim, ksize), jnp.float32, -bound, bound)
    bias = jax.random.uniform(
        k_b, (orig_dim,), jnp.float32, -bound, bound)

    x = jax.random.normal(k_x, (B, embed_dim, L), jnp.float32)

    # f32 compute here for a tight correctness check; pass
    # compute_dtype=jnp.bfloat16 on v6e/v7x for the fast MXU path.
    out = projection_forward(x, weight, bias)
    out = jax.block_until_ready(out)

    ref = _reference_forward(x, weight, bias)
    assert out.shape == (B, orig_dim, L), out.shape
    err = float(jnp.max(jnp.abs(out - ref)))
    assert jnp.allclose(out, ref, atol=2e-4, rtol=2e-4), err

    print("KERNEL_OK")
</pallas_src>

<mosaic_0001>
module attributes {stable_mosaic.version = 11 : i64} {
  func.func @conv1d_ncl_kernel(%arg0: i32, %arg1: i32, %arg2: memref<1x32x128xf32, #tpu.memory_space<vmem>>, %arg3: memref<1x32x128xf32, #tpu.memory_space<vmem>>, %arg4: memref<12x352xf32, #tpu.memory_space<vmem>>, %arg5: memref<12x1xf32, #tpu.memory_space<vmem>>, %arg6: memref<1x12x128xf32, #tpu.memory_space<vmem>>) attributes {dimension_semantics = [#tpu.dimension_semantics<parallel>, #tpu.dimension_semantics<parallel>], iteration_bounds = array<i64: 2, 1>, scalar_prefetch = 0 : i64, scratch_operands = 0 : i64, tpu.core_type = #tpu.core_type<tc>, window_params = [{transform_indices = @transform_0, window_bounds = array<i64: 1, 32, 128>}, {transform_indices = @transform_1, window_bounds = array<i64: 1, 32, 128>}, {pipeline_mode = #tpu.pipeline_mode<synchronous>, transform_indices = @transform_2, window_bounds = array<i64: 12, 352>}, {pipeline_mode = #tpu.pipeline_mode<synchronous>, transform_indices = @transform_3, window_bounds = array<i64: 12, 1>}, {transform_indices = @transform_4, window_bounds = array<i64: 1, 12, 128>}]} {
    %c0 = arith.constant 0 : index
    %c0_0 = arith.constant 0 : index
    %c0_1 = arith.constant 0 : index
    %0 = vector.load %arg2[%c0, %c0_0, %c0_1] : memref<1x32x128xf32, #tpu.memory_space<vmem>>, vector<1x32x128xf32>
    %1 = vector.shape_cast %0 : vector<1x32x128xf32> to vector<32x128xf32>
    %c0_2 = arith.constant 0 : index
    %c0_3 = arith.constant 0 : index
    %c0_4 = arith.constant 0 : index
    %2 = vector.load %arg3[%c0_2, %c0_3, %c0_4] : memref<1x32x128xf32, #tpu.memory_space<vmem>>, vector<1x32x10xf32>
    %3 = vector.shape_cast %2 : vector<1x32x10xf32> to vector<32x10xf32>
    %4 = tpu.concatenate %1, %3 in 1 : vector<32x128xf32>, vector<32x10xf32> -> vector<32x138xf32>
    %5 = vector.extract_strided_slice %4 {offsets = [0, 0], sizes = [32, 128], strides = [1, 1]} : vector<32x138xf32> to vector<32x128xf32>
    %6 = vector.extract_strided_slice %4 {offsets = [0, 1], sizes = [32, 128], strides = [1, 1]} : vector<32x138xf32> to vector<32x128xf32>
    %7 = vector.extract_strided_slice %4 {offsets = [0, 2], sizes = [32, 128], strides = [1, 1]} : vector<32x138xf32> to vector<32x128xf32>
    %8 = vector.extract_strided_slice %4 {offsets = [0, 3], sizes = [32, 128], strides = [1, 1]} : vector<32x138xf32> to vector<32x128xf32>
    %9 = vector.extract_strided_slice %4 {offsets = [0, 4], sizes = [32, 128], strides = [1, 1]} : vector<32x138xf32> to vector<32x128xf32>
    %10 = vector.extract_strided_slice %4 {offsets = [0, 5], sizes = [32, 128], strides = [1, 1]} : vector<32x138xf32> to vector<32x128xf32>
    %11 = vector.extract_strided_slice %4 {offsets = [0, 6], sizes = [32, 128], strides = [1, 1]} : vector<32x138xf32> to vector<32x128xf32>
    %12 = vector.extract_strided_slice %4 {offsets = [0, 7], sizes = [32, 128], strides = [1, 1]} : vector<32x138xf32> to vector<32x128xf32>
    %13 = vector.extract_strided_slice %4 {offsets = [0, 8], sizes = [32, 128], strides = [1, 1]} : vector<32x138xf32> to vector<32x128xf32>
    %14 = vector.extract_strided_slice %4 {offsets = [0, 9], sizes = [32, 128], strides = [1, 1]} : vector<32x138xf32> to vector<32x128xf32>
    %15 = vector.extract_strided_slice %4 {offsets = [0, 10], sizes = [32, 128], strides = [1, 1]} : vector<32x138xf32> to vector<32x128xf32>
    %16 = tpu.concatenate %5, %6, %7, %8, %9, %10, %11, %12, %13, %14, %15 in 0 : vector<32x128xf32>, vector<32x128xf32>, vector<32x128xf32>, vector<32x128xf32>, vector<32x128xf32>, vector<32x128xf32>, vector<32x128xf32>, vector<32x128xf32>, vector<32x128xf32>, vector<32x128xf32>, vector<32x128xf32> -> vector<352x128xf32>
    %c0_5 = arith.constant 0 : index
    %c0_6 = arith.constant 0 : index
    %17 = vector.load %arg4[%c0_5, %c0_6] : memref<12x352xf32, #tpu.memory_space<vmem>>, vector<12x352xf32>
    %cst = arith.constant dense<0.000000e+00> : vector<12x128xf32>
    %18 = tpu.matmul %17, %16, %cst {dimension_numbers = #tpu.dot_dimension_numbers<[1], [0], [0], [1], [0, 0, 1, 1], [], []>} : vector<12x352xf32>, vector<352x128xf32>, vector<12x128xf32> -> vector<12x128xf32>
    %c0_7 = arith.constant 0 : index
    %c0_8 = arith.constant 0 : index
    %19 = vector.load %arg5[%c0_7, %c0_8] : memref<12x1xf32, #tpu.memory_space<vmem>>, vector<12x1xf32>
    %20 = vector.broadcast %19 : vector<12x1xf32> to vector<12x128xf32>
    %21 = arith.addf %18, %20 : vector<12x128xf32>
    %c0_9 = arith.constant 0 : index
    %c0_10 = arith.constant 0 : index
    %c0_11 = arith.constant 0 : index
    %22 = vector.load %arg6[%c0_9, %c0_10, %c0_11] : memref<1x12x128xf32, #tpu.memory_space<vmem>>, vector<1x12x128xf32>
    %23 = vector.shape_cast %22 : vector<1x12x128xf32> to vector<12x128xf32>
    %24 = vector.shape_cast %21 : vector<12x128xf32> to vector<1x12x128xf32>
    tpu.vector_store %arg6[%c0_9, %c0_10, %c0_11], %24 {strides = array<i32>} : memref<1x12x128xf32, #tpu.memory_space<vmem>>, vector<1x12x128xf32>,
    return
  }
  func.func @transform_0(%arg0: i32, %arg1: i32) -> (i32, i32, i32) {
    %c0_i32 = arith.constant 0 : i32
    %c0_i32_0 = arith.constant 0 : i32
    return %arg0, %c0_i32, %arg1 : i32, i32, i32
  }
  func.func @transform_1(%arg0: i32, %arg1: i32) -> (i32, i32, i32) {
    %c1_i32 = arith.constant 1 : i32
    %0 = arith.addi %arg1, %c1_i32 : i32
    %c1_i32_0 = arith.constant 1 : i32
    %1 = arith.muli %0, %c1_i32_0 : i32
    %c0_i32 = arith.constant 0 : i32
    %c0_i32_1 = arith.constant 0 : i32
    return %arg0, %c0_i32, %1 : i32, i32, i32
  }
  func.func @transform_2(%arg0: i32, %arg1: i32) -> (i32, i32) {
    %c0_i32 = arith.constant 0 : i32
    %c0_i32_0 = arith.constant 0 : i32
    %c0_i32_1 = arith.constant 0 : i32
    return %c0_i32, %c0_i32_0 : i32, i32
  }
  func.func @transform_3(%arg0: i32, %arg1: i32) -> (i32, i32) {
    %c0_i32 = arith.constant 0 : i32
    %c0_i32_0 = arith.constant 0 : i32
    %c0_i32_1 = arith.constant 0 : i32
    return %c0_i32, %c0_i32_0 : i32, i32
  }
  func.func @transform_4(%arg0: i32, %arg1: i32) -> (i32, i32, i32) {
    %c0_i32 = arith.constant 0 : i32
    %c0_i32_0 = arith.constant 0 : i32
    return %arg0, %c0_i32, %arg1 : i32, i32, i32
  }
}

</mosaic_0001>

<bundles_post_ra>
// kernel: tpu_custom_call.1
= control target key start
LH: loop header
LB: loop body
LE: loop exit
PB: predicated region body
PF: predicated region fallthrough
CT: control target
= control target key end

     0   :  { %s1571_s0 = inlined_call_operand.hbm [shape: f32[2,32,256], index: 0, kind: input, shape index: {}]   ;;  %s1572_s1 = inlined_call_operand.hbm [shape: f32[2,32,256], index: 1, kind: input, shape index: {}]   ;;  %s1573_s2 = inlined_call_operand.hbm [shape: f32[12,352], index: 2, kind: input, shape index: {}]   ;;  %s1574_s3 = inlined_call_operand.vmem [shape: f32[12,1], index: 3, kind: input, shape index: {}]   ;;  %s1575_s4 = inlined_call_operand.vmem [shape: f32[2,12,128], index: 4, kind: output, shape index: {}]  }
   0x1   :  { %1580 = sst [smem:[#allocation12_spill]] %s1571_s0 }
   0x2   :  { %1581 = sst [smem:[#allocation13_spill]] %s1573_s2 }
   0x3   :  { %9 = vsyncpa [#allocation3], 0 }
   0x4   :  { %11 = vsyncpa [#allocation3 + $0x1], 0 }
   0x5   :  { %12 = vsyncpa [#allocation5], 0 }
   0x6   :  { %14 = vsyncpa [#allocation5 + $0x1], 0  ;;  %s1250_s15 = smov 0   ;;  %s1252_s16 = smov 0  }
   0x7   :  { %s1254_s17 = smov 0   ;;  %s1256_s18 = smov 0  }
   0x8   :  { %s1258_s19 = smov 0   ;;  %s1260_s20 = smov 0  }
   0x9 LB: > { %s1578_s21 = sadd.s32 4294967295, %s1204_s20   ;;  %s41_s22 = sadd.s32 1, %s1192_s17  ;;  %s1204_s20 = sphi %s1260_s20, %s20_s20   ;;  %s1200_s19 = sphi %s1258_s19, %s1600_s19   ;;  %s1196_s18 = sphi %s1256_s18, %s1599_s18   ;;  %s1192_s17 = sphi %s1254_s17, %s1598_s17   ;;  %s1188_s16 = sphi %s1252_s16, %s1597_s16   ;;  %s1184_s15 = sphi %s1250_s15, %s1596_s15  }
   0xa   : > { %p48_p0 = scmp.ne.s32.totalorder %s1192_s17, %s1188_s16  ;;  %p49_p1 = scmp.eq.s32.totalorder %s1204_s20, 0 }
   0xb   : > { %p54_p2 = scmp.ne.s32.totalorder %s1188_s16, %s1184_s15  ;;  %p1286_p3 = scmp.eq.s32.totalorder %s1578_s21, 0 }
   0xc   : > { %p50_p4 = por %p49_p1, %p48_p0  ;;  %p873_p5 = scmp.ge.s32.totalorder %s1204_s20, 1 }
   0xd   : > { %p1293_p6 = por %p1286_p3, %p54_p2  ;;  %p165_p7 = scmp.lt.s32.totalorder %s1204_s20, 3 }
   0xe   : > { %s1206_s26 = smov [#allocation6]   ;;  %p994_p10 = scmp.lt.s32.totalorder %s1204_s20, 2 }
   0xf   : > { %s1583_s24 = scalar_select %p1293_p6, 1, 0 }
  0x10   : > { %p1298_p8 = pnand %p873_p5, %p165_p7  ;;  %s177_s27 = sshll.u32 %s1206_s26, 4  ;;  %s178_s27 = int_to_ptr.vmem [resolvable:$true] %s177_s27 }
  0x11   : > { %p1311_p12 = pnand %p994_p10, %p50_p4  ;;  %s32_s30 = sadd.s32 1, %s1200_s19 }
  0x12   : > { %s1584_s25 = scalar_select %p1298_p8, 1, 0 }
  0x13   : > { %p982_p9 = pneg %p1298_p8  ;;  %s1074_s5 = scalar_lea.vmem %s178_s27, 768 }
  0x14   : > { %p1075_p0 = scmp.ne.s32.totalorder %s178_s27, %s1074_s5  ;;  %p1082_p5 = scmp.lt.s32.totalorder %s178_s27, %s178_s27 }
  0x15   : > { %p1307_p11 = pnand %p982_p9, %p1286_p3  ;;  %p1083_p7 = scmp.lt.s32.totalorder %s1074_s5, %s1074_s5 }
  0x17   : > { %p1065_p13 = pneg %p1307_p11  ;;  %p1084_p6 = por %p1083_p7, %p1082_p5 }
  0x19   : > { %p1077_p1 = pnand %p1075_p0, %p1065_p13 }
  0x1b   : > { %p1078_p2 = pneg %p1077_p1 }
  0x1d   : > { %p1085_p8 = pnand %p1084_p6, %p1078_p2 }
  0x1f   : > { %1088 = shalt.err (!%p1085_p8)
}
  0x20   : > { %s1207_s6 = smov 384   ;;  %s1208_s7 = smov 24  }
  0x21   : > { %s1587_s2 = sld [smem:[#allocation13_spill]]  ;;  %p34_p4 = scmp.ge.s32.totalorder %s32_s30, 2 }
  0x22   : > { %s194_s10 = sand.u32 1, %s1192_s17   ;;  %s892_s11 = sshll.u32 %s1200_s19, 10 }
  0x23   : > { %s1602_s30 = smov (%p34_p4, %s32_s30), 0  ;;  %s1327_s12 = sshll.u32 %s194_s10, 5 }
  0x24   : > { %1588 = sst [smem:[#allocation10_spill]] %s1602_s30  ;;  %s36_s13 = ssub.s32 %s1200_s19, %s1602_s30 }
  0x25   : > { %p39_p6 = scmp.eq.s32.totalorder %s36_s13, 0  ;;  %s1589_s0 = sld [smem:[#allocation12_spill]] }
  0x26   : > { %s198_s28 = scalar_lea.vmem [#allocation2], %s1327_s12  ;;  %p1091_p8 = pneg %p1311_p12 }
  0x27   : > { %985 = dma.hbm_to_vmem [thread:$0]  (!%p1307_p11), %s1587_s2, 768, %s178_s27, [#allocation5], %s1207_s6, %s1207_s6, %s1208_s7  }
  0x28   : > { %s206_s5 = sshll.u32 %s198_s28, 4  ;;  %s195_s6 = scalar_lea.sflag [#allocation3], %s194_s10  ;;  %s207_s5 = int_to_ptr.vmem [resolvable:$true] %s206_s5 }
  0x29   : > { %s1340_s27 = scalar_select %p39_p6, %s1192_s17, %s41_s22  }
  0x2a   : > { %s1102_s7 = scalar_lea.vmem %s207_s5, 512  ;;  %s1209_s8 = smov [#allocation2]  }
  0x2b   : > { %s205_s26 = scalar_lea.hbm %s1589_s0, %s892_s11  ;;  %1590 = sst [smem:[#allocation11_spill]] %s1340_s27 }
  0x2c   : > { %p1103_p9 = scmp.ne.s32.totalorder %s207_s5, %s1102_s7  ;;  %s1107_s9 = sshll.u32 %s1209_s8, 4  ;;  %s1108_s9 = int_to_ptr.vmem [resolvable:$false] %s1107_s9 }
  0x2d   : > { %s1109_s13 = scalar_lea.vmem %s1108_s9, 1024  ;;  %p1110_p13 = scmp.lt.s32.totalorder %s207_s5, %s1108_s9 }
  0x2e   : > { %p1105_p10 = pnand %p1103_p9, %p1091_p8  ;;  %p1111_p0 = scmp.lt.s32.totalorder %s1109_s13, %s1102_s7 }
  0x30   : > { %p1106_p11 = pneg %p1105_p10  ;;  %p1112_p1 = por %p1111_p0, %p1110_p13 }
  0x32   : > { %p1113_p2 = pnand %p1112_p1, %p1106_p11 }
  0x34   : > { %1116 = shalt.err (!%p1113_p2)
}
  0x35   : > { %s1210_s22 = smov 256   ;;  %s1211_s10 = smov 128  }
  0x36   : > { %s1212_s14 = smov 8   ;;  %s791_s8 = scalar_lea.hbm %s1572_s1, %s892_s11 }
  0x37   : > { %989 = dma.hbm_to_vmem [thread:$0]  (!%p1311_p12), %s205_s26, 512, %s207_s5, %s195_s6, %s1210_s22, %s1211_s10, %s1212_s14  }
  0x38   : > { %s220_s9 = scalar_lea.vmem [#allocation4], %s1327_s12  ;;  %s792_s13 = scalar_lea.hbm %s791_s8, 128 }
  0x39   : > { %s229_s7 = sshll.u32 %s220_s9, 4  ;;  %s216_s21 = sand.u32 1, %s1204_s20   ;;  %s230_s7 = int_to_ptr.vmem [resolvable:$true] %s229_s7 }
  0x3a   : > { %s217_s0 = scalar_lea.sflag [#allocation5], %s216_s21  ;;  %s1130_s2 = scalar_lea.vmem %s230_s7, 512 }
  0x3b   : > { %p1131_p5 = scmp.ne.s32.totalorder %s230_s7, %s1130_s2  ;;  %s1213_s30 = smov [#allocation4]  }
  0x3c   : > { %s1135_s27 = sshll.u32 %s1213_s30, 4  ;;  %s1136_s27 = int_to_ptr.vmem [resolvable:$false] %s1135_s27 }
  0x3d   : > { %p1133_p7 = pnand %p1131_p5, %p1091_p8  ;;  %s1137_s26 = scalar_lea.vmem %s1136_s27, 1024 }
  0x3e   : > { %p1138_p6 = scmp.lt.s32.totalorder %s230_s7, %s1136_s27  ;;  %p1139_p9 = scmp.lt.s32.totalorder %s1137_s26, %s1130_s2 }
  0x3f   : > { %p1134_p4 = pneg %p1133_p7 }
  0x40   : > { %p1140_p10 = por %p1139_p9, %p1138_p6 }
  0x42   : > { %p1141_p11 = pnand %p1140_p10, %p1134_p4 }
  0x44   : > { %1144 = shalt.err (!%p1141_p11)
}
  0x45   : > { %992 = dma.hbm_to_vmem [thread:$0]  (!%p1311_p12), %s792_s13, 512, %s230_s7, %s217_s0, %s1210_s22, %s1211_s10, %s1212_s14  }
  0x46   : > { %p1591_p13 = scmp.ne.s32.totalorder %s1584_s25, 0 }
  0x47   : > { %s243_s21 = sand.u32 (!%p1591_p13), 1, %s1188_s16   ;;  %p1592_p8 = scmp.ne.s32.totalorder (!%p1591_p13), %s1583_s24, 0 }
  0x48   : > { %241 = sbr.rel (%p1591_p13) target bundleno = 558 (0x22e), region = 36  ;;  %s883_s11 = sshll.u32 (!%p1591_p13), %s243_s21, 5 }
  0x49   : > { %s244_s12 = scalar_lea.sflag (!%p1591_p13), [#allocation3], %s243_s21  ;;  %s1364_s5 = scalar_lea.vmem (!%p1591_p13), [#allocation2], %s883_s11 }
  0x4d   : > { %1171 = dma.done.wait (%p1592_p8), %s244_s12, 512  }
  0x4e   : > { %1173 = vsyncadd (%p1592_p8), %s244_s12, 4294966784  ;;  %s1593_s2 = sadd.s32 4294967295, %s1204_s20   ;;  %s256_s30 = scalar_lea.vmem [#allocation4], %s883_s11 }
  0x4f   : > { %s252_s29 = sand.u32 1, %s1593_s2  }
  0x50   : > { %s253_s0 = scalar_lea.sflag [#allocation5], %s252_s29 }
  0x51   : > { %1175 = dma.done.wait (%p1592_p8), %s253_s0, 512  }
  0x52   : > { %1177 = vsyncadd (%p1592_p8), %s253_s0, 4294966784 }
  0x53   : > { %1179 = dma.done.wait (%p1286_p3), [#allocation5], 768  }
  0x54   : > { %1181 = vsyncadd (%p1286_p3), [#allocation5], 4294966528  ;;  %v1381_v0 = vld [vmem:[%s1364_s5 + $0x18] sm:$0xff]  ;;  %s1214_s25 = smov 125   ;;  %s1215_s27 = smov 121   ;;  %v1389_v2 = vld [vmem:[%s256_s30 + $0x10] sm:$0xff] }
  0x55   : > { %380 = vrot.lane.b32.xlu1 %v1381_v0, %s1214_s25  ;;  %480 = vrot.lane.b32.xlu0 %v1381_v0, %s1215_s27  ;;  %v1385_v1 = vld [vmem:[%s256_s30 + $0x18] sm:$0xff]  ;;  %v1392_v3 = vld [vmem:[%s1364_s5 + $0x10] sm:$0xff]  ;;  %s1216_s23 = smov 122   ;;  %s1217_s24 = smov 126   ;;  %vm484_vm0 = vcmask 990208   ;;  %vm384_vm1 = vcmask 1022976  }
  0x56   : > { %v1398_v4 = vld [vmem:[%s256_s30 + $0x8] sm:$0xff]  ;;  %v1407_v6 = vld [vmem:[%s256_s30] sm:$0xff]  ;;  %s1218_s6 = smov 123   ;;  %s1219_s22 = smov 118   ;;  %vm459_vm2 = vcmask 998400   ;;  %v570_v33 = vld [vmem:[#allocation6 + $0x10] sm:$0xff] }
  0x57   : > { %v1401_v5 = vld [vmem:[%s1364_s5 + $0x8] sm:$0xff]  ;;  %v1410_v7 = vld [vmem:[%s1364_s5] sm:$0xff]  ;;  %s1220_s10 = smov 127   ;;  %s1221_s14 = smov 124   ;;  %vm586_vm3 = vcmask 785408   ;;  %vm359_vm4 = vcmask 1031168  }
  0x58   : > { %s1222_s15 = smov 119   ;;  %v569_v26 = vld [vmem:[#allocation6 + $0x8] sm:$0xff]  ;;  %s1223_s28 = smov 120   ;;  %971 = vmatprep.mubr.msk.f32.mxu1 %vm586_vm3, %v570_v33  ;;  %v1224_v37 = vmov 0   ;;  %v574_v47 = vld [vmem:[%s1574_s3] sm:$0xff]  ;;  %vm434_vm5 = vcmask 1006592  }
  0x59   : > { %382 = vrot.lane.b32.xlu1 %v1385_v1, %s1214_s25  ;;  %482 = vrot.lane.b32.xlu0 %v1385_v1, %s1215_s27  ;;  %v575_v44 = vld [vmem:[%s1574_s3 + $0x8] sm:$0xf]  ;;  %vm559_vm6 = vcmask 965632   ;;  %vm334_vm7 = vcmask 1039360   ;;  %vm409_vm8 = vcmask 1014784   ;;  %vm534_vm9 = vcmask 973824  }
  0x5a   : > { %657 = vmatprep.mubr.f32.mxu0 %v569_v26  ;;  %1062 = vset.pattern.permute.xlu1 %v1224_v37  ;;  %vm509_vm10 = vcmask 982016   ;;  %p294_p3 = scmp.lt.s32.totalorder %s1196_s18, 1 }
  0x5b   : > { %1061 = vset.pattern.permute.xlu0 %v1224_v37 }
  0x5c   : > { %s1604_s18 = smov (!%p294_p3, %s1196_s18), 1 }
  0x5d   : > { %478 = vrot.lane.b32.xlu1 %v1389_v2, %s1215_s27  ;;  %476 = vrot.lane.b32.xlu0 %v1392_v3, %s1215_s27  ;;  %s894_s26 = sshll.u32 %s1604_s18, 4 }
  0x5e   : > { %s301_s12 = scalar_lea.vmem %s1575_s4, %s894_s26 }
  0x61   : > { %378 = vrot.lane.b32.xlu1 %v1389_v2, %s1214_s25  ;;  %376 = vrot.lane.b32.xlu0 %v1392_v3, %s1214_s25 }
  0x65   : > { %474 = vrot.lane.b32.xlu1 %v1398_v4, %s1215_s27  ;;  %472 = vrot.lane.b32.xlu0 %v1401_v5, %s1215_s27 }
  0x69   : > { %374 = vrot.lane.b32.xlu1 %v1398_v4, %s1214_s25  ;;  %372 = vrot.lane.b32.xlu0 %v1401_v5, %s1214_s25 }
  0x6d   : > { %470 = vrot.lane.b32.xlu1 %v1407_v6, %s1215_s27  ;;  %468 = vrot.lane.b32.xlu0 %v1410_v7, %s1215_s27 }
  0x71   : > { %370 = vrot.lane.b32.xlu1 %v1407_v6, %s1214_s25  ;;  %368 = vrot.lane.b32.xlu0 %v1410_v7, %s1214_s25 }
  0x75   : > { %457 = vrot.lane.b32.xlu1 %v1385_v1, %s1216_s23  ;;  %455 = vrot.lane.b32.xlu0 %v1381_v0, %s1216_s23 }
  0x79   : > { %357 = vrot.lane.b32.xlu1 %v1385_v1, %s1217_s24  ;;  %355 = vrot.lane.b32.xlu0 %v1381_v0, %s1217_s24 }
  0x7d   : > { %453 = vrot.lane.b32.xlu1 %v1389_v2, %s1216_s23  ;;  %451 = vrot.lane.b32.xlu0 %v1392_v3, %s1216_s23 }
  0x81   : > { %353 = vrot.lane.b32.xlu1 %v1389_v2, %s1217_s24  ;;  %351 = vrot.lane.b32.xlu0 %v1392_v3, %s1217_s24 }
  0x85   : > { %449 = vrot.lane.b32.xlu1 %v1398_v4, %s1216_s23  ;;  %447 = vrot.lane.b32.xlu0 %v1401_v5, %s1216_s23 }
  0x89   : > { %349 = vrot.lane.b32.xlu1 %v1398_v4, %s1217_s24  ;;  %347 = vrot.lane.b32.xlu0 %v1401_v5, %s1217_s24 }
  0x8d   : > { %445 = vrot.lane.b32.xlu1 %v1407_v6, %s1216_s23  ;;  %443 = vrot.lane.b32.xlu0 %v1410_v7, %s1216_s23 }
  0x91   : > { %345 = vrot.lane.b32.xlu1 %v1407_v6, %s1217_s24  ;;  %343 = vrot.lane.b32.xlu0 %v1410_v7, %s1217_s24 }
  0x95   : > { %432 = vrot.lane.b32.xlu1 %v1385_v1, %s1218_s6  ;;  %430 = vrot.lane.b32.xlu0 %v1381_v0, %s1218_s6 }
  0x99   : > { %557 = vrot.lane.b32.xlu1 %v1385_v1, %s1219_s22  ;;  %555 = vrot.lane.b32.xlu0 %v1381_v0, %s1219_s22 }
  0x9d   : > { %332 = vrot.lane.b32.xlu1 %v1385_v1, %s1220_s10  ;;  %330 = vrot.lane.b32.xlu0 %v1381_v0, %s1220_s10 }
  0xa1   : > { %428 = vrot.lane.b32.xlu1 %v1389_v2, %s1218_s6  ;;  %426 = vrot.lane.b32.xlu0 %v1392_v3, %s1218_s6 }
  0xa5   : > { %553 = vrot.lane.b32.xlu1 %v1389_v2, %s1219_s22  ;;  %551 = vrot.lane.b32.xlu0 %v1392_v3, %s1219_s22 }
  0xa9   : > { %328 = vrot.lane.b32.xlu1 %v1389_v2, %s1220_s10  ;;  %326 = vrot.lane.b32.xlu0 %v1392_v3, %s1220_s10 }
  0xad   : > { %424 = vrot.lane.b32.xlu1 %v1398_v4, %s1218_s6  ;;  %422 = vrot.lane.b32.xlu0 %v1401_v5, %s1218_s6 }
  0xb1   : > { %549 = vrot.lane.b32.xlu1 %v1398_v4, %s1219_s22  ;;  %547 = vrot.lane.b32.xlu0 %v1401_v5, %s1219_s22 }
  0xb5   : > { %324 = vrot.lane.b32.xlu1 %v1398_v4, %s1220_s10  ;;  %322 = vrot.lane.b32.xlu0 %v1401_v5, %s1220_s10 }
  0xb9   : > { %420 = vrot.lane.b32.xlu1 %v1407_v6, %s1218_s6  ;;  %418 = vrot.lane.b32.xlu0 %v1410_v7, %s1218_s6 }
  0xbd   : > { %545 = vrot.lane.b32.xlu1 %v1407_v6, %s1219_s22  ;;  %543 = vrot.lane.b32.xlu0 %v1410_v7, %s1219_s22 }
  0xc1   : > { %320 = vrot.lane.b32.xlu1 %v1407_v6, %s1220_s10  ;;  %318 = vrot.lane.b32.xlu0 %v1410_v7, %s1220_s10 }
  0xc5   : > { %407 = vrot.lane.b32.xlu1 %v1385_v1, %s1221_s14  ;;  %405 = vrot.lane.b32.xlu0 %v1381_v0, %s1221_s14 }
  0xc7   : > { %v381_v8 = vpop.permute.xlu1 %380  ;;  %v481_v9 = vpop.permute.xlu0 %480 }
  0xc9   : > { %532 = vrot.lane.b32.xlu1 %v1385_v1, %s1222_s15  ;;  %530 = vrot.lane.b32.xlu0 %v1381_v0, %s1222_s15 }
  0xcb   : > { %v383_v10 = vpop.permute.xlu1 %382  ;;  %v483_v11 = vpop.permute.xlu0 %482 }
  0xcc   : > { %v488_v12 = vsel %vm484_vm0, %v481_v9, %v483_v11  ;;  %v388_v13 = vsel %vm384_vm1, %v381_v8, %v383_v10 }
  0xcd   : > { %403 = vrot.lane.b32.xlu1 %v1389_v2, %s1221_s14  ;;  %895 = vmatprep.subr.mxu0 %v488_v12 }
  0xce   : > { %401 = vrot.lane.b32.xlu0 %v1392_v3, %s1221_s14  ;;  %896 = vmatpush3.msra.mxu0 %v388_v13 }
  0xcf   : > { %v479_v14 = vpop.permute.xlu1 %478  ;;  %v477_v15 = vpop.permute.xlu0 %476 }
  0xd0   : > { %v487_v16 = vsel %vm484_vm0, %v477_v15, %v479_v14 }
  0xd1   : > { %528 = vrot.lane.b32.xlu1 %v1389_v2, %s1222_s15  ;;  %897 = vmatprep.subr.mxu0 %v487_v16 }
  0xd2   : > { %526 = vrot.lane.b32.xlu0 %v1392_v3, %s1222_s15 }
  0xd3   : > { %v379_v17 = vpop.permute.xlu1 %378  ;;  %v377_v18 = vpop.permute.xlu0 %376 }
  0xd4   : > { %v387_v19 = vsel %vm384_vm1, %v377_v18, %v379_v17 }
  0xd5   : > { %399 = vrot.lane.b32.xlu1 %v1398_v4, %s1221_s14  ;;  %898 = vmatpush3.msra.mxu0 %v387_v19 }
  0xd6   : > { %397 = vrot.lane.b32.xlu0 %v1401_v5, %s1221_s14 }
  0xd7   : > { %v475_v20 = vpop.permute.xlu1 %474  ;;  %v473_v21 = vpop.permute.xlu0 %472 }
  0xd8   : > { %v486_v22 = vsel %vm484_vm0, %v473_v21, %v475_v20 }
  0xd9   : > { %524 = vrot.lane.b32.xlu1 %v1398_v4, %s1222_s15  ;;  %899 = vmatprep.subr.mxu0 %v486_v22 }
  0xda   : > { %522 = vrot.lane.b32.xlu0 %v1401_v5, %s1222_s15 }
  0xdb   : > { %v375_v23 = vpop.permute.xlu1 %374  ;;  %v373_v24 = vpop.permute.xlu0 %372 }
  0xdc   : > { %v386_v25 = vsel %vm384_vm1, %v373_v24, %v375_v23 }
  0xdd   : > { %395 = vrot.lane.b32.xlu1 %v1407_v6, %s1221_s14  ;;  %900 = vmatpush3.msra.mxu0 %v386_v25 }
  0xde   : > { %393 = vrot.lane.b32.xlu0 %v1410_v7, %s1221_s14 }
  0xdf   : > { %v471_v27 = vpop.permute.xlu1 %470  ;;  %v469_v28 = vpop.permute.xlu0 %468 }
  0xe0   : > { %v485_v29 = vsel %vm484_vm0, %v469_v28, %v471_v27 }
  0xe1   : > { %520 = vrot.lane.b32.xlu1 %v1407_v6, %s1222_s15  ;;  %901 = vmatprep.subr.mxu0 %v485_v29 }
  0xe2   : > { %518 = vrot.lane.b32.xlu0 %v1410_v7, %s1222_s15 }
  0xe3   : > { %v371_v30 = vpop.permute.xlu1 %370  ;;  %v369_v31 = vpop.permute.xlu0 %368 }
  0xe4   : > { %v385_v32 = vsel %vm384_vm1, %v369_v31, %v371_v30 }
  0xe5   : > { %507 = vrot.lane.b32.xlu1 %v1385_v1, %s1223_s28  ;;  %902 = vmatpush3.msra.mxu0 %v385_v32 }
  0xe6   : > { %505 = vrot.lane.b32.xlu0 %v1381_v0, %s1223_s28 }
  0xe7   : > { %v458_v34 = vpop.permute.xlu1 %457  ;;  %v456_v35 = vpop.permute.xlu0 %455 }
  0xe8   : > { %v463_v36 = vsel %vm459_vm2, %v456_v35, %v458_v34 }
  0xe9   : > { %503 = vrot.lane.b32.xlu1 %v1389_v2, %s1223_s28  ;;  %903 = vmatprep.subr.mxu0 %v463_v36 }
  0xea   : > { %501 = vrot.lane.b32.xlu0 %v1392_v3, %s1223_s28 }
  0xeb   : > { %v358_v38 = vpop.permute.xlu1 %357  ;;  %v356_v39 = vpop.permute.xlu0 %355 }
  0xec   : > { %v363_v40 = vsel %vm359_vm4, %v356_v39, %v358_v38 }
  0xed   : > { %499 = vrot.lane.b32.xlu1 %v1398_v4, %s1223_s28  ;;  %904 = vmatpush3.msra.mxu0 %v363_v40 }
  0xee   : > { %497 = vrot.lane.b32.xlu0 %v1401_v5, %s1223_s28 }
  0xef   : > { %v454_v41 = vpop.permute.xlu1 %453  ;;  %v452_v42 = vpop.permute.xlu0 %451 }
  0xf0   : > { %v462_v43 = vsel %vm459_vm2, %v452_v42, %v454_v41 }
  0xf1   : > { %495 = vrot.lane.b32.xlu1 %v1407_v6, %s1223_s28  ;;  %905 = vmatprep.subr.mxu0 %v462_v43 }
  0xf2   : > { %493 = vrot.lane.b32.xlu0 %v1410_v7, %s1223_s28 }
  0xf3   : > { %v354_v45 = vpop.permute.xlu1 %353  ;;  %v352_v46 = vpop.permute.xlu0 %351 }
  0xf4   : > { %v362_v48 = vsel %vm359_vm4, %v352_v46, %v354_v45 }
  0xf5   : > { %906 = vmatpush3.msra.mxu0 %v362_v48  ;;  %583 = vperm.xlu1 %1062, %v575_v44  }
  0xf6   : > { %578 = vperm.xlu0 %1061, %v574_v47  }
  0xf7   : > { %v450_v49 = vpop.permute.xlu1 %449  ;;  %v448_v50 = vpop.permute.xlu0 %447 }
  0xf8   : > { %v461_v51 = vsel %vm459_vm2, %v448_v50, %v450_v49 }
  0xf9   : > { %907 = vmatprep.subr.mxu0 %v461_v51 }
  0xfb   : > { %v350_v52 = vpop.permute.xlu1 %349  ;;  %v348_v53 = vpop.permute.xlu0 %347 }
  0xfc   : > { %v361_v54 = vsel %vm359_vm4, %v348_v53, %v350_v52 }
  0xfd   : > { %908 = vmatpush3.msra.mxu0 %v361_v54 }
  0xff   : > { %v446_v55 = vpop.permute.xlu1 %445  ;;  %v444_v56 = vpop.permute.xlu0 %443 }
 0x100   : > { %v460_v57 = vsel %vm459_vm2, %v444_v56, %v446_v55  ;;  %v568_v56 = vld [vmem:[#allocation6] sm:$0xff] }
 0x101   : > { %909 = vmatprep.subr.mxu0 %v460_v57  ;;  %v572_v57 = vld [vmem:[#allocation6 + $0x20] sm:$0xf] }
 0x103   : > { %v346_v58 = vpop.permute.xlu1 %345  ;;  %v344_v59 = vpop.permute.xlu0 %343 }
 0x104   : > { %v360_v60 = vsel %vm359_vm4, %v344_v59, %v346_v58 }
 0x105   : > { %910 = vmatpush3.msra.mxu0 %v360_v60 }
 0x107   : > { %v433_v61 = vpop.permute.xlu1 %432  ;;  %v431_v62 = vpop.permute.xlu0 %430 }
 0x108   : > { %v438_v63 = vsel %vm434_vm5, %v431_v62, %v433_v61 }
 0x109   : > { %911 = vmatprep.subr.mxu0 %v438_v63 }
 0x10b   : > { %v558_v1 = vpop.permute.xlu1 %557  ;;  %v556_v2 = vpop.permute.xlu0 %555 }
 0x10c   : > { %v563_v4 = vsel %vm559_vm6, %v556_v2, %v558_v1 }
 0x10d   : > { %947 = vmatprep.subr.mxu1 %v563_v4 }
 0x10e   : > { %948 = vmatpush3.msra.mxu1 %v563_v4 }
 0x10f   : > { %v333_v6 = vpop.permute.xlu1 %332  ;;  %v331_v8 = vpop.permute.xlu0 %330 }
 0x110   : > { %v338_v9 = vsel %vm334_vm7, %v331_v8, %v333_v6 }
 0x111   : > { %912 = vmatpush3.msra.mxu0 %v338_v9 }
 0x113   : > { %v429_v10 = vpop.permute.xlu1 %428  ;;  %v427_v11 = vpop.permute.xlu0 %426 }
 0x114   : > { %v437_v12 = vsel %vm434_vm5, %v427_v11, %v429_v10 }
 0x115   : > { %913 = vmatprep.subr.mxu0 %v437_v12  ;;  %v573_v12 = vld [vmem:[#allocation6 + $0x28] sm:$0xf] }
 0x117   : > { %v554_v13 = vpop.permute.xlu1 %553  ;;  %v552_v14 = vpop.permute.xlu0 %551 }
 0x118   : > { %v562_v15 = vsel %vm559_vm6, %v552_v14, %v554_v13 }
 0x119   : > { %949 = vmatprep.subr.mxu1 %v562_v15 }
 0x11a   : > { %950 = vmatpush3.msra.mxu1 %v562_v15 }
 0x11b   : > { %v329_v16 = vpop.permute.xlu1 %328  ;;  %v327_v17 = vpop.permute.xlu0 %326 }
 0x11c   : > { %v337_v18 = vsel %vm334_vm7, %v327_v17, %v329_v16 }
 0x11d   : > { %914 = vmatpush3.msra.mxu0 %v337_v18 }
 0x11f   : > { %v425_v19 = vpop.permute.xlu1 %424  ;;  %v423_v20 = vpop.permute.xlu0 %422 }
 0x120   : > { %v436_v21 = vsel %vm434_vm5, %v423_v20, %v425_v19 }
 0x121   : > { %915 = vmatprep.subr.mxu0 %v436_v21 }
 0x123   : > { %v550_v22 = vpop.permute.xlu1 %549  ;;  %v548_v23 = vpop.permute.xlu0 %547 }
 0x124   : > { %v561_v24 = vsel %vm559_vm6, %v548_v23, %v550_v22 }
 0x125   : > { %951 = vmatprep.subr.mxu1 %v561_v24 }
 0x126   : > { %952 = vmatpush3.msra.mxu1 %v561_v24 }
 0x127   : > { %v325_v25 = vpop.permute.xlu1 %324  ;;  %v323_v26 = vpop.permute.xlu0 %322 }
 0x128   : > { %v336_v27 = vsel %vm334_vm7, %v323_v26, %v325_v25 }
 0x129   : > { %916 = vmatpush3.msra.mxu0 %v336_v27 }
 0x12b   : > { %v421_v28 = vpop.permute.xlu1 %420  ;;  %v419_v29 = vpop.permute.xlu0 %418 }
 0x12c   : > { %v435_v30 = vsel %vm434_vm5, %v419_v29, %v421_v28 }
 0x12d   : > { %917 = vmatprep.subr.mxu0 %v435_v30 }
 0x12f   : > { %v546_v31 = vpop.permute.xlu1 %545  ;;  %v544_v32 = vpop.permute.xlu0 %543 }
 0x130   : > { %v560_v33 = vsel %vm559_vm6, %v544_v32, %v546_v31 }
 0x131   : > { %953 = vmatprep.subr.mxu1 %v560_v33 }
 0x132   : > { %954 = vmatpush3.msra.mxu1 %v560_v33 }
 0x133   : > { %v321_v34 = vpop.permute.xlu1 %320  ;;  %v319_v35 = vpop.permute.xlu0 %318 }
 0x134   : > { %v335_v36 = vsel %vm334_vm7, %v319_v35, %v321_v34 }
 0x135   : > { %918 = vmatpush3.msra.mxu0 %v335_v36 }
 0x137   : > { %v408_v37 = vpop.permute.xlu1 %407  ;;  %v406_v38 = vpop.permute.xlu0 %405 }
 0x138   : > { %v413_v39 = vsel %vm409_vm8, %v406_v38, %v408_v37 }
 0x139   : > { %919 = vmatprep.subr.mxu0 %v413_v39 }
 0x13a   : > { %920 = vmatpush3.msra.mxu0 %v1381_v0 }
 0x13b   : > { %v533_v40 = vpop.permute.xlu1 %532  ;;  %v531_v41 = vpop.permute.xlu0 %530 }
 0x13c   : > { %v538_v42 = vsel %vm534_vm9, %v531_v41, %v533_v40 }
 0x13d   : > { %955 = vmatprep.subr.mxu1 %v538_v42 }
 0x13e   : > { %956 = vmatpush3.msra.mxu1 %v538_v42 }
 0x13f   : > { %v404_v43 = vpop.permute.xlu1 %403 }
 0x140   : > { %v402_v44 = vpop.permute.xlu0 %401 }
 0x141   : > { %v412_v45 = vsel %vm409_vm8, %v402_v44, %v404_v43 }
 0x142   : > { %921 = vmatprep.subr.mxu0 %v412_v45 }
 0x143   : > { %v529_v46 = vpop.permute.xlu1 %528  ;;  %922 = vmatpush3.msra.mxu0 %v1392_v3 }
 0x144   : > { %v527_v47 = vpop.permute.xlu0 %526 }
 0x145   : > { %v537_v48 = vsel %vm534_vm9, %v527_v47, %v529_v46 }
 0x146   : > { %957 = vmatprep.subr.mxu1 %v537_v48 }
 0x147   : > { %958 = vmatpush3.msra.mxu1 %v537_v48  ;;  %v400_v0 = vpop.permute.xlu1 %399 }
 0x148   : > { %v398_v49 = vpop.permute.xlu0 %397 }
 0x149   : > { %v411_v50 = vsel %vm409_vm8, %v398_v49, %v400_v0 }
 0x14a   : > { %923 = vmatprep.subr.mxu0 %v411_v50 }
 0x14b   : > { %v525_v51 = vpop.permute.xlu1 %524  ;;  %924 = vmatpush3.msra.mxu0 %v1401_v5  ;;  %v571_v5 = vld [vmem:[#allocation6 + $0x18] sm:$0xf] }
 0x14c   : > { %v523_v52 = vpop.permute.xlu0 %522 }
 0x14d   : > { %v536_v53 = vsel %vm534_vm9, %v523_v52, %v525_v51 }
 0x14e   : > { %959 = vmatprep.subr.mxu1 %v536_v53 }
 0x14f   : > { %960 = vmatpush3.msra.mxu1 %v536_v53  ;;  %v396_v54 = vpop.permute.xlu1 %395 }
 0x150   : > { %v394_v3 = vpop.permute.xlu0 %393 }
 0x151   : > { %v410_v55 = vsel %vm409_vm8, %v394_v3, %v396_v54 }
 0x152   : > { %925 = vmatprep.subr.mxu0 %v410_v55 }
 0x153   : > { %v521_v58 = vpop.permute.xlu1 %520  ;;  %926 = vmatpush3.msra.mxu0 %v1410_v7 }
 0x154   : > { %v519_v59 = vpop.permute.xlu0 %518  ;;  %658 = vmatmul.mubr.f32.vlgmr.msra.gmra.mxu0 %v568_v56 }
 0x155   : > { %v535_v60 = vsel %vm534_vm9, %v519_v59, %v521_v58  ;;  %662 = vmatprep.mubr.f32.mxu0 %v572_v57 }
 0x156   : > { %961 = vmatprep.subr.mxu1 %v535_v60 }
 0x157   : > { %962 = vmatpush3.msra.mxu1 %v535_v60  ;;  %v508_v61 = vpop.permute.xlu1 %507 }
 0x158   : > { %v506_v62 = vpop.permute.xlu0 %505  ;;  %663 = vmatmul.mubr.f32.gmra.mxu0 %v571_v5 }
 0x159   : > { %v513_v63 = vsel %vm509_vm10, %v506_v62, %v508_v61 }
 0x15a   : > { %963 = vmatprep.subr.mxu1 %v513_v63 }
 0x15b   : > { %964 = vmatpush3.msra.mxu1 %v513_v63  ;;  %v504_v1 = vpop.permute.xlu1 %503 }
 0x15c   : > { %v502_v2 = vpop.permute.xlu0 %501 }
 0x15d   : > { %v512_v7 = vsel %vm509_vm10, %v502_v2, %v504_v1 }
 0x15e   : > { %965 = vmatprep.subr.mxu1 %v512_v7 }
 0x15f   : > { %966 = vmatpush3.msra.mxu1 %v512_v7  ;;  %v500_v4 = vpop.permute.xlu1 %499 }
 0x160   : > { %v498_v6 = vpop.permute.xlu0 %497 }
 0x161   : > { %v511_v8 = vsel %vm509_vm10, %v498_v6, %v500_v4 }
 0x162   : > { %967 = vmatprep.subr.mxu1 %v511_v8 }
 0x163   : > { %968 = vmatpush3.msra.mxu1 %v511_v8  ;;  %v496_v9 = vpop.permute.xlu1 %495 }
 0x164   : > { %v494_v10 = vpop.permute.xlu0 %493 }
 0x165   : > { %v510_v11 = vsel %vm509_vm10, %v494_v10, %v496_v9 }
 0x166   : > { %969 = vmatprep.subr.mxu1 %v510_v11 }
 0x167   : > { %970 = vmatpush3.msra.mxu1 %v510_v11 }
 0x168   : > { %972 = vmatmul.mubr.msk.f32.vlgmr.msra.gmra.mxu1 %vm586_vm3, %v573_v12 }
 0x170   : > { %v584_v18 = vpop.permute.xlu1 %583 }
 0x171   : > { %v579_v21 = vpop.permute.xlu0 %578 }
 0x214   : > { %v927_v13 = vpop.f32.mrf.mxu0 }
 0x216   : > { %v928_v14 = vpop.f32.mrf.mxu0 }
 0x217   : > { %v929_v19 = vadd.f32 %v928_v14, %v927_v13 }
 0x218   : > { %v930_v15 = vpop.f32.mrf.mxu0 }
 0x219   : > { %v660_v23 = vadd.f32 %v929_v19, %v579_v21 }
 0x21a   : > { %v931_v16 = vpop.f32.mrf.mxu0 }
 0x21b   : > { %v932_v17 = vadd.f32 %v931_v16, %v930_v15 }
 0x21d   : > { %v665_v20 = vadd.f32 %v932_v17, %v584_v18 }
 0x228   : > { %v973_v22 = vpop.f32.mrf.mxu1 }
 0x229   : > { %v740_v24 = vadd.f32 %v973_v22, %v665_v20 }
 0x22a   : > { %v734_v25 = vpop.f32.mrf.mxu1 }
 0x22b   : > { %744 = vst [vmem:[%s301_s12 + $0x8] sm:$0xf] %v740_v24  ;;  %v735_v26 = vadd.f32 %v734_v25, %v660_v23 }
 0x22d   : > { %743 = vst [vmem:[%s301_s12] sm:$0xff] %v735_v26 }
 0x22e PF: > { %s20_s20 = sadd.s32 1, %s1204_s20   ;;  %s1594_s5 = sld [smem:[#allocation11_spill]] }
 0x22f   : > { %p17_p12 = scmp.ge.s32.totalorder %s20_s20, 4   ;;  %s1595_s2 = sld [smem:[#allocation10_spill]] }
 0x230   : > { %s1596_s15 = smov %s1188_s16  ;;  %s1597_s16 = smov %s1192_s17 }
 0x231   : > { %s1599_s18 = smov %s1200_s19  ;;  %19 = sbr.rel (!%p17_p12) target bundleno = 9 (0x9), region = 93 }
 0x234   : > { %s1598_s17 = smov %s1594_s5 }
 0x235   : > { %s1600_s19 = smov %s1595_s2 }
 0x236   :  { %772 = vsyncpa [#allocation3], 1 }
 0x237   :  { %774 = vsyncpa [#allocation3 + $0x1], 1 }
 0x238   :  { %775 = vsyncpa [#allocation5], 1 }
 0x239   :  { %777 = vsyncpa [#allocation5 + $0x1], 1 }

</bundles_post_ra>
